<compile_context>
chip_gen: v6e
topology: v6e:2x2x1
jax: 0.10.0
libtpu: 0.0.40
codegen_flags: <defaults>
</compile_context>

<pallas_src>
import functools
import math

import jax
import jax.numpy as jnp
from jax import lax
from jax.experimental import pallas as pl
from jax.experimental.pallas import tpu as pltpu


def _round_up(x, m):
    return (x + m - 1) // m * m


def _vmem_tile_bytes(shape, dtype):
    """Rough VMEM footprint of an array in (8, 128)-tiled layout."""
    if len(shape) == 0:
        return 4
    if len(shape) == 1:
        lead, rows, cols = 1, 1, shape[0]
    else:
        lead = int(math.prod(shape[:-2])) if len(shape) > 2 else 1
        rows, cols = shape[-2], shape[-1]
    return lead * _round_up(rows, 8) * _round_up(cols, 128) * jnp.dtype(dtype).itemsize


def _downsample_kernel(ee_ref, eeh_ref, eo_ref, eoh_ref, oe_ref, oo_ref,
                       w_ref, bias_ref, o_ref):
    """One (batch, output-row-band) step of the stride-2 3x3 conv.

    ee/eo/oe/oo are the 4 stride-2 polyphase components of the zero-padded NHWC
    input (rows even/odd x cols even/odd); eeh/eoh are the 1-row halos needed by
    the kh=2 taps.  Every tap is a unit-offset slice of these bands (no strided
    access in-kernel); each tap feeds one accumulated MXU matmul against
    W[kh, kw] with f32 accumulation.
    """
    rh = ee_ref.shape[1]          # output rows in this band
    c = ee_ref.shape[3]           # input channels
    npix = o_ref.shape[1]         # rh * Wo
    cp = o_ref.shape[2]           # output channels (possibly lane-padded)
    wo = npix // rh               # output cols

    # Extend the even-row phases with their 1-row halo (used by the kh=2 taps).
    ee = jnp.concatenate([ee_ref[0], eeh_ref[0]], axis=0)    # (rh+1, Wo+1, C)
    eo = jnp.concatenate([eo_ref[0], eoh_ref[0]], axis=0)    # (rh+1, Wo+1, C)
    oe = oe_ref[0]                                            # (rh,   Wo+1, C)
    oo = oo_ref[0]                                            # (rh,   Wo+1, C)

    def tap(src, dr, dc):
        # (rh, Wo, C) view of one conv tap, flattened to (npix, C) GEMM rows.
        return src[dr:dr + rh, dc:dc + wo, :].reshape(npix, c)

    # Order must match w_hwio.reshape(9, C, C): t = kh * 3 + kw.
    taps = (tap(ee, 0, 0), tap(eo, 0, 0), tap(ee, 0, 1),     # kh = 0
            tap(oe, 0, 0), tap(oo, 0, 0), tap(oe, 0, 1),     # kh = 1
            tap(ee, 1, 0), tap(eo, 1, 0), tap(ee, 1, 1))     # kh = 2

    acc = jnp.zeros((npix, cp), jnp.float32)
    for t in range(9):
        acc = acc + jnp.dot(taps[t], w_ref[t], preferred_element_type=jnp.float32)
    o_ref[0] = (acc + bias_ref[...]).astype(o_ref.dtype)


def downsample(x_nchw, w_hwio, bias, *, compute_dtype=jnp.bfloat16,
               target_pixels=1024):
    """DownSample.forward: (B, C, H, W) -> (B, C, H//2, W//2).

    Matches nn.Conv2d(C, C, kernel_size=3, stride=2, padding=1) for even H, W
    (the PyTorch module's shape assert only holds for even spatial sizes).
    compute_dtype=bf16 (default) halves HBM traffic of this memory-bound op
    while keeping f32 accumulation; use jnp.float32 for bit-faithful parity.
    """
    B, C, H, W = x_nchw.shape
    if H % 2 or W % 2:
        raise ValueError("DownSample expects even H and W (module asserts H//2, W//2).")
    Ho, Wo = H // 2, W // 2
    out_dtype = x_nchw.dtype
    out_esize = jnp.dtype(out_dtype).itemsize
    cdt = jnp.dtype(compute_dtype)

    # Lane-dense output channels: pad to a multiple of 128 when cheap (C >= 64);
    # C % 128 == 0 is already dense; tiny C stays unpadded (problem is tiny).
    if C % 128 == 0 or C < 64:
        Cp = C
    else:
        Cp = _round_up(C, 128)

    # ---- wrapper: NHWC transpose + zero pad + stride-2 polyphase split -------
    # (~1x input bytes, fused by XLA; replaces the 2.25x HBM im2col intermediate)
    xh = jnp.transpose(x_nchw, (0, 2, 3, 1)).astype(cdt)
    xp = jnp.pad(xh, ((0, 0), (1, 1), (1, 1), (0, 0)))        # (B, H+2, W+2, C)
    ee = xp[:, 0::2, 0::2, :]                                  # (B, Ho+1, Wo+1, C)
    eo = xp[:, 0::2, 1::2, :]
    oe = xp[:, 1::2, 0::2, :]
    oo = xp[:, 1::2, 1::2, :]
    Wo1 = ee.shape[2]                                          # Wo + 1

    # ---- band (tile) sizing ---------------------------------------------------
    r_align = 8 // math.gcd(Wo, 8)             # keep rh*Wo a sublane multiple
    rh = max(1, min(Ho, max(1, target_pixels // Wo)))
    rh = min(_round_up(rh, r_align), _round_up(Ho, r_align))

    def n_bands_for(r):
        return _round_up(Ho, r) // r

    # v7x has 2 TensorCores: keep >= 2 total grid steps when the shape allows.
    if B * n_bands_for(rh) < 2:
        r2 = max(r_align, _round_up(-(-Ho // 2), r_align))
        if n_bands_for(r2) >= 2:
            rh = r2

    def working_bytes(r):
        main = _vmem_tile_bytes((1, r, Wo1, C), cdt)
        halo = _vmem_tile_bytes((1, 1, Wo1, C), cdt)
        out_b = _vmem_tile_bytes((1, r * Wo, Cp), out_dtype)
        w_b = _vmem_tile_bytes((9, C, Cp), cdt)
        bias_b = _vmem_tile_bytes((1, Cp), jnp.float32)
        acc_b = _vmem_tile_bytes((r * Wo, Cp), jnp.float32)
        # double-buffered pipeline buffers + in-kernel temporaries (extended
        # phases, live taps, f32 accumulator).
        return 2 * (4 * main + 2 * halo + out_b + w_b + bias_b) + 4 * main + acc_b

    budget = 24 * 1024 * 1024                   # sized against v7x's 64 MiB VMEM
    while rh > r_align and working_bytes(rh) > budget:
        rh = max(r_align, _round_up(rh // 2, r_align))

    Hop = _round_up(Ho, rh)
    n_bands = Hop // rh
    vmem_limit = int(min(48 * 1024 * 1024,
                         max(2 * working_bytes(rh), 16 * 1024 * 1024)))

    # Phases need Hop + 1 rows so every band and its halo row stays in bounds.
    def pad_rows(p):
        need = Hop + 1 - p.shape[1]
        return jnp.pad(p, ((0, 0), (0, need), (0, 0), (0, 0))) if need > 0 else p

    ee, eo, oe, oo = pad_rows(ee), pad_rows(eo), pad_rows(oe), pad_rows(oo)

    # ---- weights / bias --------------------------------------------------------
    w9 = w_hwio.reshape(9, C, C).astype(cdt)                   # row t = kh*3 + kw
    b_row = bias.astype(jnp.float32).reshape(1, C)
    if Cp != C:
        w9 = jnp.pad(w9, ((0, 0), (0, 0), (0, Cp - C)))
        b_row = jnp.pad(b_row, ((0, 0), (0, Cp - C)))

    # ---- pallas call -----------------------------------------------------------
    esize = cdt.itemsize
    cost = pl.CostEstimate(
        flops=2 * B * Ho * Wo * 9 * C * C,                      # real work only
        transcendentals=0,
        bytes_accessed=int((ee.size + eo.size + oe.size + oo.size) * esize
                           + w9.size * esize + b_row.size * 4
                           + B * Hop * Wo * Cp * out_esize),
    )

    band_spec = pl.BlockSpec((1, rh, Wo1, C), lambda b, i: (b, i, 0, 0))
    halo_spec = pl.BlockSpec((1, 1, Wo1, C), lambda b, i: (b, (i + 1) * rh, 0, 0))

    out_flat = pl.pallas_call(
        _downsample_kernel,
        out_shape=jax.ShapeDtypeStruct((B, Hop * Wo, Cp), out_dtype),
        grid_spec=pltpu.PrefetchScalarGridSpec(
            num_scalar_prefetch=0,
            grid=(B, n_bands),
            in_specs=[
                band_spec, halo_spec,                            # ee band + halo
                band_spec, halo_spec,                            # eo band + halo
                band_spec,                                       # oe band
                band_spec,                                       # oo band
                pl.BlockSpec((9, C, Cp), lambda b, i: (0, 0, 0)),  # weights (resident)
                pl.BlockSpec((1, Cp), lambda b, i: (0, 0)),        # bias (f32)
            ],
            out_specs=pl.BlockSpec((1, rh * Wo, Cp), lambda b, i: (b, i, 0)),
        ),
        compiler_params=pltpu.CompilerParams(
            dimension_semantics=("parallel", "parallel"),
            vmem_limit_bytes=vmem_limit,
        ),
        cost_estimate=cost,
    )(ee, ee, eo, eo, oe, oo, w9, b_row)
    # TODO(synk): for very large C (>~1k) on v7x, add an N-tiling grid axis over Cp
    # so the resident weight block stays within the 64 MiB VMEM budget.

    out = out_flat.reshape(B, Hop, Wo, Cp)[:, :Ho, :, :C]
    return jnp.transpose(out, (0, 3, 1, 2))


def _reference(x_nchw, w_hwio, bias):
    # Pure-JAX reference: same conv via lax.conv_general_dilated (NCHW, OIHW).
    w_oihw = jnp.transpose(w_hwio, (3, 2, 0, 1))
    out = lax.conv_general_dilated(
        x_nchw, w_oihw,
        window_strides=(2, 2),
        padding=((1, 1), (1, 1)),
        dimension_numbers=("NCHW", "OIHW", "NCHW"),
    )
    return out + bias.reshape(1, -1, 1, 1)


if __name__ == "__main__":
    B, C, H, W = 2, 4, 16, 16
    key = jax.random.PRNGKey(0)
    kx, kw, kb = jax.random.split(key, 3)

    x = jax.random.normal(kx, (B, C, H, W), dtype=jnp.float32)
    # Deterministic synthetic params of nn.Conv2d(C, C, 3, stride=2, padding=1).
    w_hwio = jax.random.normal(kw, (3, 3, C, C), dtype=jnp.float32) * 0.1
    bias = jax.random.normal(kb, (C,), dtype=jnp.float32) * 0.1

    ref = _reference(x, w_hwio, bias)
    expected_shape = (B, C, H // 2, W // 2)

    # Default fast path: bf16 GEMM operands, f32 accumulation.
    out = jax.block_until_ready(jax.jit(downsample)(x, w_hwio, bias))
    assert out.shape == expected_shape, f"Expected {expected_shape}, got {out.shape}"
    assert jnp.allclose(out, ref, atol=5e-2, rtol=5e-2), "bf16 path mismatch vs reference"

    # f32-operand parity mode (bit-faithful to the PyTorch module's numerics).
    fwd_f32 = jax.jit(functools.partial(downsample, compute_dtype=jnp.float32))
    out32 = jax.block_until_ready(fwd_f32(x, w_hwio, bias))
    assert out32.shape == expected_shape
    assert jnp.allclose(out32, ref, atol=1e-4, rtol=1e-4), "f32 path mismatch vs reference"

    # Exercise the lane-padded output path (C >= 64, C % 128 != 0).
    C2, H2, W2 = 64, 16, 16
    x2 = jax.random.normal(kx, (1, C2, H2, W2), dtype=jnp.float32)
    w2 = jax.random.normal(kw, (3, 3, C2, C2), dtype=jnp.float32) * 0.05
    b2 = jax.random.normal(kb, (C2,), dtype=jnp.float32) * 0.05
    ref2 = _reference(x2, w2, b2)
    out2 = jax.block_until_ready(jax.jit(downsample)(x2, w2, b2))
    assert out2.shape == (1, C2, H2 // 2, W2 // 2)
    assert jnp.allclose(out2, ref2, atol=5e-2, rtol=5e-2), "padded-channel path mismatch"

    print("KERNEL_OK")
</pallas_src>

<mosaic_0001>
module attributes {stable_mosaic.version = 11 : i64} {
  func.func @_downsample_kernel(%arg0: i32, %arg1: i32, %arg2: memref<1x8x9x4xbf16, #tpu.memory_space<vmem>>, %arg3: memref<1x1x9x4xbf16, #tpu.memory_space<vmem>>, %arg4: memref<1x8x9x4xbf16, #tpu.memory_space<vmem>>, %arg5: memref<1x1x9x4xbf16, #tpu.memory_space<vmem>>, %arg6: memref<1x8x9x4xbf16, #tpu.memory_space<vmem>>, %arg7: memref<1x8x9x4xbf16, #tpu.memory_space<vmem>>, %arg8: memref<9x4x4xbf16, #tpu.memory_space<vmem>>, %arg9: memref<1x4xf32, #tpu.memory_space<vmem>>, %arg10: memref<1x64x4xf32, #tpu.memory_space<vmem>>) attributes {dimension_semantics = [#tpu.dimension_semantics<parallel>, #tpu.dimension_semantics<parallel>], iteration_bounds = array<i64: 2, 1>, scalar_prefetch = 0 : i64, scratch_operands = 0 : i64, tpu.core_type = #tpu.core_type<tc>, window_params = [{transform_indices = @transform_0, window_bounds = array<i64: 1, 8, 9, 4>}, {transform_indices = @transform_1, window_bounds = array<i64: 1, 1, 9, 4>}, {transform_indices = @transform_2, window_bounds = array<i64: 1, 8, 9, 4>}, {transform_indices = @transform_3, window_bounds = array<i64: 1, 1, 9, 4>}, {transform_indices = @transform_4, window_bounds = array<i64: 1, 8, 9, 4>}, {transform_indices = @transform_5, window_bounds = array<i64: 1, 8, 9, 4>}, {pipeline_mode = #tpu.pipeline_mode<synchronous>, transform_indices = @transform_6, window_bounds = array<i64: 9, 4, 4>}, {pipeline_mode = #tpu.pipeline_mode<synchronous>, transform_indices = @transform_7, window_bounds = array<i64: 1, 4>}, {transform_indices = @transform_8, window_bounds = array<i64: 1, 64, 4>}]} {
    %c0 = arith.constant 0 : index
    %c0_0 = arith.constant 0 : index
    %c0_1 = arith.constant 0 : index
    %c0_2 = arith.constant 0 : index
    %0 = vector.load %arg2[%c0, %c0_0, %c0_1, %c0_2] : memref<1x8x9x4xbf16, #tpu.memory_space<vmem>>, vector<1x8x9x4xbf16>
    %1 = vector.shape_cast %0 : vector<1x8x9x4xbf16> to vector<8x9x4xbf16>
    %c0_3 = arith.constant 0 : index
    %c0_4 = arith.constant 0 : index
    %c0_5 = arith.constant 0 : index
    %c0_6 = arith.constant 0 : index
    %2 = vector.load %arg3[%c0_3, %c0_4, %c0_5, %c0_6] : memref<1x1x9x4xbf16, #tpu.memory_space<vmem>>, vector<1x1x9x4xbf16>
    %3 = vector.shape_cast %2 : vector<1x1x9x4xbf16> to vector<1x9x4xbf16>
    %4 = tpu.concatenate %1, %3 in 0 : vector<8x9x4xbf16>, vector<1x9x4xbf16> -> vector<9x9x4xbf16>
    %c0_7 = arith.constant 0 : index
    %c0_8 = arith.constant 0 : index
    %c0_9 = arith.constant 0 : index
    %c0_10 = arith.constant 0 : index
    %5 = vector.load %arg4[%c0_7, %c0_8, %c0_9, %c0_10] : memref<1x8x9x4xbf16, #tpu.memory_space<vmem>>, vector<1x8x9x4xbf16>
    %6 = vector.shape_cast %5 : vector<1x8x9x4xbf16> to vector<8x9x4xbf16>
    %c0_11 = arith.constant 0 : index
    %c0_12 = arith.constant 0 : index
    %c0_13 = arith.constant 0 : index
    %c0_14 = arith.constant 0 : index
    %7 = vector.load %arg5[%c0_11, %c0_12, %c0_13, %c0_14] : memref<1x1x9x4xbf16, #tpu.memory_space<vmem>>, vector<1x1x9x4xbf16>
    %8 = vector.shape_cast %7 : vector<1x1x9x4xbf16> to vector<1x9x4xbf16>
    %9 = tpu.concatenate %6, %8 in 0 : vector<8x9x4xbf16>, vector<1x9x4xbf16> -> vector<9x9x4xbf16>
    %c0_15 = arith.constant 0 : index
    %c0_16 = arith.constant 0 : index
    %c0_17 = arith.constant 0 : index
    %c0_18 = arith.constant 0 : index
    %10 = vector.load %arg6[%c0_15, %c0_16, %c0_17, %c0_18] : memref<1x8x9x4xbf16, #tpu.memory_space<vmem>>, vector<1x8x9x4xbf16>
    %11 = vector.shape_cast %10 : vector<1x8x9x4xbf16> to vector<8x9x4xbf16>
    %c0_19 = arith.constant 0 : index
    %c0_20 = arith.constant 0 : index
    %c0_21 = arith.constant 0 : index
    %c0_22 = arith.constant 0 : index
    %12 = vector.load %arg7[%c0_19, %c0_20, %c0_21, %c0_22] : memref<1x8x9x4xbf16, #tpu.memory_space<vmem>>, vector<1x8x9x4xbf16>
    %13 = vector.shape_cast %12 : vector<1x8x9x4xbf16> to vector<8x9x4xbf16>
    %14 = vector.extract_strided_slice %4 {offsets = [0, 0, 0], sizes = [8, 8, 4], strides = [1, 1, 1]} : vector<9x9x4xbf16> to vector<8x8x4xbf16>
    %15 = vector.shape_cast %14 : vector<8x8x4xbf16> to vector<64x4xbf16>
    %16 = vector.extract_strided_slice %9 {offsets = [0, 0, 0], sizes = [8, 8, 4], strides = [1, 1, 1]} : vector<9x9x4xbf16> to vector<8x8x4xbf16>
    %17 = vector.shape_cast %16 : vector<8x8x4xbf16> to vector<64x4xbf16>
    %18 = vector.extract_strided_slice %4 {offsets = [0, 1, 0], sizes = [8, 8, 4], strides = [1, 1, 1]} : vector<9x9x4xbf16> to vector<8x8x4xbf16>
    %19 = vector.shape_cast %18 : vector<8x8x4xbf16> to vector<64x4xbf16>
    %20 = vector.extract_strided_slice %11 {offsets = [0, 0, 0], sizes = [8, 8, 4], strides = [1, 1, 1]} : vector<8x9x4xbf16> to vector<8x8x4xbf16>
    %21 = vector.shape_cast %20 : vector<8x8x4xbf16> to vector<64x4xbf16>
    %22 = vector.extract_strided_slice %13 {offsets = [0, 0, 0], sizes = [8, 8, 4], strides = [1, 1, 1]} : vector<8x9x4xbf16> to vector<8x8x4xbf16>
    %23 = vector.shape_cast %22 : vector<8x8x4xbf16> to vector<64x4xbf16>
    %24 = vector.extract_strided_slice %11 {offsets = [0, 1, 0], sizes = [8, 8, 4], strides = [1, 1, 1]} : vector<8x9x4xbf16> to vector<8x8x4xbf16>
    %25 = vector.shape_cast %24 : vector<8x8x4xbf16> to vector<64x4xbf16>
    %26 = vector.extract_strided_slice %4 {offsets = [1, 0, 0], sizes = [8, 8, 4], strides = [1, 1, 1]} : vector<9x9x4xbf16> to vector<8x8x4xbf16>
    %27 = vector.shape_cast %26 : vector<8x8x4xbf16> to vector<64x4xbf16>
    %28 = vector.extract_strided_slice %9 {offsets = [1, 0, 0], sizes = [8, 8, 4], strides = [1, 1, 1]} : vector<9x9x4xbf16> to vector<8x8x4xbf16>
    %29 = vector.shape_cast %28 : vector<8x8x4xbf16> to vector<64x4xbf16>
    %30 = vector.extract_strided_slice %4 {offsets = [1, 1, 0], sizes = [8, 8, 4], strides = [1, 1, 1]} : vector<9x9x4xbf16> to vector<8x8x4xbf16>
    %31 = vector.shape_cast %30 : vector<8x8x4xbf16> to vector<64x4xbf16>
    %cst = arith.constant 0.000000e+00 : f32
    %32 = vector.broadcast %cst : f32 to vector<64x4xf32>
    %c0_23 = arith.constant 0 : index
    %c0_24 = arith.constant 0 : index
    %c0_25 = arith.constant 0 : index
    %33 = vector.load %arg8[%c0_23, %c0_24, %c0_25] : memref<9x4x4xbf16, #tpu.memory_space<vmem>>, vector<1x4x4xbf16>
    %34 = vector.shape_cast %33 : vector<1x4x4xbf16> to vector<4x4xbf16>
    %cst_26 = arith.constant dense<0.000000e+00> : vector<64x4xf32>
    %35 = tpu.matmul %15, %34, %cst_26 {dimension_numbers = #tpu.dot_dimension_numbers<[1], [0], [0], [1], [0, 0, 1, 1], [], []>} : vector<64x4xbf16>, vector<4x4xbf16>, vector<64x4xf32> -> vector<64x4xf32>
    %36 = arith.addf %32, %35 : vector<64x4xf32>
    %c1 = arith.constant 1 : index
    %c0_27 = arith.constant 0 : index
    %c0_28 = arith.constant 0 : index
    %37 = vector.load %arg8[%c1, %c0_27, %c0_28] : memref<9x4x4xbf16, #tpu.memory_space<vmem>>, vector<1x4x4xbf16>
    %38 = vector.shape_cast %37 : vector<1x4x4xbf16> to vector<4x4xbf16>
    %cst_29 = arith.constant dense<0.000000e+00> : vector<64x4xf32>
    %39 = tpu.matmul %17, %38, %cst_29 {dimension_numbers = #tpu.dot_dimension_numbers<[1], [0], [0], [1], [0, 0, 1, 1], [], []>} : vector<64x4xbf16>, vector<4x4xbf16>, vector<64x4xf32> -> vector<64x4xf32>
    %40 = arith.addf %36, %39 : vector<64x4xf32>
    %c2 = arith.constant 2 : index
    %c0_30 = arith.constant 0 : index
    %c0_31 = arith.constant 0 : index
    %41 = vector.load %arg8[%c2, %c0_30, %c0_31] : memref<9x4x4xbf16, #tpu.memory_space<vmem>>, vector<1x4x4xbf16>
    %42 = vector.shape_cast %41 : vector<1x4x4xbf16> to vector<4x4xbf16>
    %cst_32 = arith.constant dense<0.000000e+00> : vector<64x4xf32>
    %43 = tpu.matmul %19, %42, %cst_32 {dimension_numbers = #tpu.dot_dimension_numbers<[1], [0], [0], [1], [0, 0, 1, 1], [], []>} : vector<64x4xbf16>, vector<4x4xbf16>, vector<64x4xf32> -> vector<64x4xf32>
    %44 = arith.addf %40, %43 : vector<64x4xf32>
    %c3 = arith.constant 3 : index
    %c0_33 = arith.constant 0 : index
    %c0_34 = arith.constant 0 : index
    %45 = vector.load %arg8[%c3, %c0_33, %c0_34] : memref<9x4x4xbf16, #tpu.memory_space<vmem>>, vector<1x4x4xbf16>
    %46 = vector.shape_cast %45 : vector<1x4x4xbf16> to vector<4x4xbf16>
    %cst_35 = arith.constant dense<0.000000e+00> : vector<64x4xf32>
    %47 = tpu.matmul %21, %46, %cst_35 {dimension_numbers = #tpu.dot_dimension_numbers<[1], [0], [0], [1], [0, 0, 1, 1], [], []>} : vector<64x4xbf16>, vector<4x4xbf16>, vector<64x4xf32> -> vector<64x4xf32>
    %48 = arith.addf %44, %47 : vector<64x4xf32>
    %c4 = arith.constant 4 : index
    %c0_36 = arith.constant 0 : index
    %c0_37 = arith.constant 0 : index
    %49 = vector.load %arg8[%c4, %c0_36, %c0_37] : memref<9x4x4xbf16, #tpu.memory_space<vmem>>, vector<1x4x4xbf16>
    %50 = vector.shape_cast %49 : vector<1x4x4xbf16> to vector<4x4xbf16>
    %cst_38 = arith.constant dense<0.000000e+00> : vector<64x4xf32>
    %51 = tpu.matmul %23, %50, %cst_38 {dimension_numbers = #tpu.dot_dimension_numbers<[1], [0], [0], [1], [0, 0, 1, 1], [], []>} : vector<64x4xbf16>, vector<4x4xbf16>, vector<64x4xf32> -> vector<64x4xf32>
    %52 = arith.addf %48, %51 : vector<64x4xf32>
    %c5 = arith.constant 5 : index
    %c0_39 = arith.constant 0 : index
    %c0_40 = arith.constant 0 : index
    %53 = vector.load %arg8[%c5, %c0_39, %c0_40] : memref<9x4x4xbf16, #tpu.memory_space<vmem>>, vector<1x4x4xbf16>
    %54 = vector.shape_cast %53 : vector<1x4x4xbf16> to vector<4x4xbf16>
    %cst_41 = arith.constant dense<0.000000e+00> : vector<64x4xf32>
    %55 = tpu.matmul %25, %54, %cst_41 {dimension_numbers = #tpu.dot_dimension_numbers<[1], [0], [0], [1], [0, 0, 1, 1], [], []>} : vector<64x4xbf16>, vector<4x4xbf16>, vector<64x4xf32> -> vector<64x4xf32>
    %56 = arith.addf %52, %55 : vector<64x4xf32>
    %c6 = arith.constant 6 : index
    %c0_42 = arith.constant 0 : index
    %c0_43 = arith.constant 0 : index
    %57 = vector.load %arg8[%c6, %c0_42, %c0_43] : memref<9x4x4xbf16, #tpu.memory_space<vmem>>, vector<1x4x4xbf16>
    %58 = vector.shape_cast %57 : vector<1x4x4xbf16> to vector<4x4xbf16>
    %cst_44 = arith.constant dense<0.000000e+00> : vector<64x4xf32>
    %59 = tpu.matmul %27, %58, %cst_44 {dimension_numbers = #tpu.dot_dimension_numbers<[1], [0], [0], [1], [0, 0, 1, 1], [], []>} : vector<64x4xbf16>, vector<4x4xbf16>, vector<64x4xf32> -> vector<64x4xf32>
    %60 = arith.addf %56, %59 : vector<64x4xf32>
    %c7 = arith.constant 7 : index
    %c0_45 = arith.constant 0 : index
    %c0_46 = arith.constant 0 : index
    %61 = vector.load %arg8[%c7, %c0_45, %c0_46] : memref<9x4x4xbf16, #tpu.memory_space<vmem>>, vector<1x4x4xbf16>
    %62 = vector.shape_cast %61 : vector<1x4x4xbf16> to vector<4x4xbf16>
    %cst_47 = arith.constant dense<0.000000e+00> : vector<64x4xf32>
    %63 = tpu.matmul %29, %62, %cst_47 {dimension_numbers = #tpu.dot_dimension_numbers<[1], [0], [0], [1], [0, 0, 1, 1], [], []>} : vector<64x4xbf16>, vector<4x4xbf16>, vector<64x4xf32> -> vector<64x4xf32>
    %64 = arith.addf %60, %63 : vector<64x4xf32>
    %c8 = arith.constant 8 : index
    %c0_48 = arith.constant 0 : index
    %c0_49 = arith.constant 0 : index
    %65 = vector.load %arg8[%c8, %c0_48, %c0_49] : memref<9x4x4xbf16, #tpu.memory_space<vmem>>, vector<1x4x4xbf16>
    %66 = vector.shape_cast %65 : vector<1x4x4xbf16> to vector<4x4xbf16>
    %cst_50 = arith.constant dense<0.000000e+00> : vector<64x4xf32>
    %67 = tpu.matmul %31, %66, %cst_50 {dimension_numbers = #tpu.dot_dimension_numbers<[1], [0], [0], [1], [0, 0, 1, 1], [], []>} : vector<64x4xbf16>, vector<4x4xbf16>, vector<64x4xf32> -> vector<64x4xf32>
    %68 = arith.addf %64, %67 : vector<64x4xf32>
    %c0_51 = arith.constant 0 : index
    %c0_52 = arith.constant 0 : index
    %69 = vector.load %arg9[%c0_51, %c0_52] : memref<1x4xf32, #tpu.memory_space<vmem>>, vector<1x4xf32>
    %70 = vector.broadcast %69 : vector<1x4xf32> to vector<64x4xf32>
    %71 = arith.addf %68, %70 : vector<64x4xf32>
    %c0_53 = arith.constant 0 : index
    %c0_54 = arith.constant 0 : index
    %c0_55 = arith.constant 0 : index
    %72 = vector.load %arg10[%c0_53, %c0_54, %c0_55] : memref<1x64x4xf32, #tpu.memory_space<vmem>>, vector<1x64x4xf32>
    %73 = vector.shape_cast %72 : vector<1x64x4xf32> to vector<64x4xf32>
    %74 = vector.shape_cast %71 : vector<64x4xf32> to vector<1x64x4xf32>
    tpu.vector_store %arg10[%c0_53, %c0_54, %c0_55], %74 {strides = array<i32>} : memref<1x64x4xf32, #tpu.memory_space<vmem>>, vector<1x64x4xf32>,
    return
  }
  func.func @transform_0(%arg0: i32, %arg1: i32) -> (i32, i32, i32, i32) {
    %c0_i32 = arith.constant 0 : i32
    %c0_i32_0 = arith.constant 0 : i32
    %c0_i32_1 = arith.constant 0 : i32
    return %arg0, %arg1, %c0_i32, %c0_i32_0 : i32, i32, i32, i32
  }
  func.func @transform_1(%arg0: i32, %arg1: i32) -> (i32, i32, i32, i32) {
    %c1_i32 = arith.constant 1 : i32
    %0 = arith.addi %arg1, %c1_i32 : i32
    %c8_i32 = arith.constant 8 : i32
    %1 = arith.muli %0, %c8_i32 : i32
    %c0_i32 = arith.constant 0 : i32
    %c0_i32_0 = arith.constant 0 : i32
    %c0_i32_1 = arith.constant 0 : i32
    return %arg0, %1, %c0_i32, %c0_i32_0 : i32, i32, i32, i32
  }
  func.func @transform_2(%arg0: i32, %arg1: i32) -> (i32, i32, i32, i32) {
    %c0_i32 = arith.constant 0 : i32
    %c0_i32_0 = arith.constant 0 : i32
    %c0_i32_1 = arith.constant 0 : i32
    return %arg0, %arg1, %c0_i32, %c0_i32_0 : i32, i32, i32, i32
  }
  func.func @transform_3(%arg0: i32, %arg1: i32) -> (i32, i32, i32, i32) {
    %c1_i32 = arith.constant 1 : i32
    %0 = arith.addi %arg1, %c1_i32 : i32
    %c8_i32 = arith.constant 8 : i32
    %1 = arith.muli %0, %c8_i32 : i32
    %c0_i32 = arith.constant 0 : i32
    %c0_i32_0 = arith.constant 0 : i32
    %c0_i32_1 = arith.constant 0 : i32
    return %arg0, %1, %c0_i32, %c0_i32_0 : i32, i32, i32, i32
  }
  func.func @transform_4(%arg0: i32, %arg1: i32) -> (i32, i32, i32, i32) {
    %c0_i32 = arith.constant 0 : i32
    %c0_i32_0 = arith.constant 0 : i32
    %c0_i32_1 = arith.constant 0 : i32
    return %arg0, %arg1, %c0_i32, %c0_i32_0 : i32, i32, i32, i32
  }
  func.func @transform_5(%arg0: i32, %arg1: i32) -> (i32, i32, i32, i32) {
    %c0_i32 = arith.constant 0 : i32
    %c0_i32_0 = arith.constant 0 : i32
    %c0_i32_1 = arith.constant 0 : i32
    return %arg0, %arg1, %c0_i32, %c0_i32_0 : i32, i32, i32, i32
  }
  func.func @transform_6(%arg0: i32, %arg1: i32) -> (i32, i32, i32) {
    %c0_i32 = arith.constant 0 : i32
    %c0_i32_0 = arith.constant 0 : i32
    %c0_i32_1 = arith.constant 0 : i32
    %c0_i32_2 = arith.constant 0 : i32
    return %c0_i32, %c0_i32_0, %c0_i32_1 : i32, i32, i32
  }
  func.func @transform_7(%arg0: i32, %arg1: i32) -> (i32, i32) {
    %c0_i32 = arith.constant 0 : i32
    %c0_i32_0 = arith.constant 0 : i32
    %c0_i32_1 = arith.constant 0 : i32
    return %c0_i32, %c0_i32_0 : i32, i32
  }
  func.func @transform_8(%arg0: i32, %arg1: i32) -> (i32, i32, i32) {
    %c0_i32 = arith.constant 0 : i32
    %c0_i32_0 = arith.constant 0 : i32
    return %arg0, %arg1, %c0_i32 : i32, i32, i32
  }
}

</mosaic_0001>

<bundles_post_ra>
// kernel: downsample.1
= control target key start
LH: loop header
LB: loop body
LE: loop exit
PB: predicated region body
PF: predicated region fallthrough
CT: control target
= control target key end

     0   :  { %s2454_s27 = smov 0   ;;  %s2456_s28 = smov 0   ;;  %s2821_s0 = inlined_call_operand.vmem [shape: bf16[2,9,9,4], index: 0, kind: input, shape index: {}, may-alias: {0,1}]   ;;  %s2822_s1 = inlined_call_operand.vmem [shape: bf16[2,9,9,4], index: 1, kind: input, shape index: {}, may-alias: {0,1}]   ;;  %s2823_s2 = inlined_call_operand.vmem [shape: bf16[2,9,9,4], index: 2, kind: input, shape index: {}, may-alias: {2,3}]   ;;  %s2824_s3 = inlined_call_operand.vmem [shape: bf16[2,9,9,4], index: 3, kind: input, shape index: {}, may-alias: {2,3}]   ;;  %s2825_s4 = inlined_call_operand.vmem [shape: bf16[2,9,9,4], index: 4, kind: input, shape index: {}]   ;;  %s2826_s5 = inlined_call_operand.vmem [shape: bf16[2,9,9,4], index: 5, kind: input, shape index: {}]   ;;  %s2827_s6 = inlined_call_operand.vmem [shape: bf16[9,4,4], index: 6, kind: input, shape index: {}]   ;;  %s2828_s7 = inlined_call_operand.vmem [shape: f32[1,4], index: 7, kind: input, shape index: {}]   ;;  %s2829_s8 = inlined_call_operand.vmem [shape: f32[2,64,4], index: 8, kind: output, shape index: {}]  }
   0x1   :  { %s2458_s29 = smov 0  }
   0x2 LB: > { %s30_s30 = sadd.s32 1, %s2403_s28  ;;  %p2092_p0 = scmp.ge.s32.totalorder %s2407_s29, 1  ;;  %s2407_s29 = sphi %s2458_s29, %s18_s29   ;;  %s2403_s28 = sphi %s2456_s28, %s2833_s28   ;;  %s2399_s27 = sphi %s2454_s27, %s2832_s27  }
   0x3   : > { %p32_p1 = scmp.ge.s32.totalorder %s30_s30, 2  ;;  %p426_p2 = scmp.lt.s32.totalorder %s2407_s29, 3 }
   0x5   : > { %s2835_s30 = smov (%p32_p1, %s30_s30), 0  ;;  %p427_p3 = pnand %p2092_p0, %p426_p2 }
   0x6   : > { %p547_p4 = scmp.lt.s32.totalorder (!%p427_p3), %s2399_s27, 1 }
   0x7   : > { %430 = sbr.rel (%p427_p3) target bundleno = 297 (0x129), region = 52 }
   0xc   : > { %v2101_v0 = vld [vmem:[%s2827_s6 + $0x2] sm:$0x3]  ;;  %vm990_vm0 = vcmask 1041408   ;;  %v954_v2 = vld [vmem:[%s2827_s6] sm:$0x3]  ;;  %s2837_s27 = smov (!%p547_p4, %s2399_s27), 1 }
   0xd   : > { %2327 = vmatprep.subr.msk.bf16.mxu1 %vm990_vm0, %v2101_v0  ;;  %2326 = vmatprep.subr.msk.bf16.mxu0 %vm990_vm0, %v2101_v0  ;;  %v992_v1 = vsel %vm990_vm0, %v2101_v0, 0  ;;  %v2118_v3 = vld [vmem:[%s2827_s6 + $0x4] sm:$0x3]  ;;  %v2127_v4 = vld [vmem:[%s2827_s6 + $0x6] sm:$0x3]  ;;  %s2492_s17 = smul.u32 72, %s2837_s27 }
   0xe   : > { %2325 = vmatpush3.bf16.msra.mxu1 %v992_v1  ;;  %2235 = vmatpush3.bf16.msra.mxu0 %v992_v1  ;;  %vm977_vm1 = vcmask 31744   ;;  %v1092_v5 = vsel %vm990_vm0, %v954_v2, 0  ;;  %v1186_v6 = vsel %vm990_vm0, %v2118_v3, 0  ;;  %vm713_vm2 = vsmask.f32 3328  ;;  %s2188_s11 = sshll.u32 %s2837_s27, 6 }
   0xf   : > { %2328 = vmatprep.subr.msk.bf16.mxu1 %vm990_vm0, %v954_v2  ;;  %2329 = vmatprep.subr.msk.bf16.mxu0 %vm990_vm0, %v2118_v3  ;;  %s2499_s20 = scalar_lea.vmem %s2821_s0, %s2492_s17  ;;  %s589_s23 = scalar_lea.vmem %s2823_s2, %s2492_s17  ;;  %vm714_vm3 = vsmask.f32 7440  ;;  %v2507_v7 = vsel %vm990_vm0, %v2127_v4, 0  ;;  %v2136_v15 = vld [vmem:[%s2827_s6 + $0x8] sm:$0x3] }
  0x10   : > { %v680_v8 = vld [vmem:[%s589_s23] sm:$0xf]  ;;  %v2509_v9 = vld [vmem:[%s589_s23 + $0x8] sm:$0xf]  ;;  %v2511_v10 = vld [vmem:[%s589_s23 + $0x10] sm:$0xf]  ;;  %s2632_s14 = scalar_lea.vmem %s2825_s4, %s2492_s17  ;;  %s2641_s18 = scalar_lea.vmem %s2826_s5, %s2492_s17 }
  0x11   : > { %v2102_v11 = vcombine.low %v680_v8, %v2509_v9  ;;  %v2514_v12 = vld [vmem:[%s589_s23 + $0x18] sm:$0xf]  ;;  %v2516_v13 = vld [vmem:[%s589_s23 + $0x20] sm:$0xf]  ;;  %v2518_v14 = vld [vmem:[%s589_s23 + $0x28] sm:$0xf]  ;;  %s2794_s27 = scalar_lea.vmem %s2829_s8, %s2188_s11 }
  0x12   : > { %v2523_v16 = vld [vmem:[%s589_s23 + $0x30] sm:$0xf]  ;;  %v2525_v17 = vld [vmem:[%s589_s23 + $0x38] sm:$0xf]  ;;  %v2103_v18 = vcombine.low %v2511_v10, %v2514_v12  ;;  %v2104_v19 = vcombine.low %v2516_v13, %v2518_v14  ;;  %v662_v20 = vld [vmem:[%s2499_s20] sm:$0xf] }
  0x13   : > { %2236 = vmatprep.mubr.msk.bf16.mxu0 %vm977_vm1, %v2102_v11  ;;  %v2105_v21 = vcombine.low %v2523_v16, %v2525_v17  ;;  %v2536_v22 = vld [vmem:[%s2499_s20 + $0x8] sm:$0xf]  ;;  %v717_v23 = vshrl.u32 %v662_v20, 16  ;;  %v720_v24 = vshll.u32 %v662_v20, 16  ;;  %v2539_v25 = vld [vmem:[%s2499_s20 + $0x10] sm:$0xf]  ;;  %vm2571_vm4 = vmor %vm713_vm2, %vm714_vm3 }
  0x14   : > { %2240 = vmatprep.mubr.msk.bf16.mxu1 %vm977_vm1, %v2104_v19  ;;  %2237 = vmatmul.mubr.msk.bf16.vlgmr.msra.gmra.mxu0 %vm977_vm1, %v2103_v18  ;;  %v731_v26 = vshrl.u32 %v2536_v22, 16  ;;  %v734_v27 = vshll.u32 %v2536_v22, 16  ;;  %v2110_v28 = vcombine.low %v662_v20, %v2536_v22  ;;  %v2547_v29 = vld [vmem:[%s2499_s20 + $0x18] sm:$0xf]  ;;  %v745_v30 = vshrl.u32 %v2539_v25, 16  ;;  %s2185_s23 = sadd.s32 64, %s2492_s17 }
  0x15   : > { %2241 = vmatmul.mubr.msk.bf16.vlgmr.msra.gmra.mxu1 %vm977_vm1, %v2105_v21  ;;  %2255 = vmatpush3.bf16.msra.mxu0 %v1186_v6  ;;  %v719_v31 = vrot.slane %v717_v23, 4  ;;  %v722_v32 = vrot.slane %v720_v24, 5  ;;  %v748_v33 = vshll.u32 %v2539_v25, 16  ;;  %v759_v34 = vshrl.u32 %v2547_v29, 16  ;;  %v663_v35 = vld [vmem:[%s2499_s20 + $0x4] sm:$0x1]  ;;  %s572_s26 = scalar_lea.vmem %s2822_s1, %s2185_s23  ;;  %s606_s10 = scalar_lea.vmem %s2824_s3, %s2185_s23 }
  0x16   : > { %2245 = vmatpush3.bf16.msra.mxu1 %v1092_v5  ;;  %2246 = vmatprep.mubr.msk.bf16.mxu1 %vm977_vm1, %v2110_v28  ;;  %v762_v36 = vshll.u32 %v2547_v29, 16  ;;  %v665_v37 = vld [vmem:[%s2499_s20 + $0xc] sm:$0x1]  ;;  %v726_v38 = vshll.u32 %v663_v35, 16  ;;  %v733_v39 = vrot.slane %v731_v26, 4  ;;  %v2558_v40 = vsel %vm990_vm0, %v2136_v15, 0 }
  0x17   : > { %v2145_v41 = vld [vmem:[%s2827_s6 + $0xa] sm:$0x3]  ;;  %2330 = vmatprep.subr.msk.bf16.mxu1 %vm990_vm0, %v2127_v4  ;;  %v2111_v42 = vcombine.low %v2539_v25, %v2547_v29  ;;  %v723_v43 = vor.u32 %v722_v32, %v719_v31  ;;  %v736_v44 = vrot.slane %v734_v27, 5  ;;  %v740_v45 = vshll.u32 %v665_v37, 16  ;;  %v667_v46 = vld [vmem:[%s2499_s20 + $0x14] sm:$0x1]  ;;  %2331 = vmatprep.subr.msk.bf16.mxu0 %vm990_vm0, %v2136_v15 }
  0x18   : > { %v669_v47 = vld [vmem:[%s2499_s20 + $0x1c] sm:$0x1]  ;;  %v728_v49 = vrot.slane %v726_v38, 5  ;;  %v747_v50 = vrot.slane %v745_v30, 4  ;;  %v750_v51 = vrot.slane %v748_v33, 5  ;;  %v754_v52 = vshll.u32 %v667_v46, 16 }
  0x19   : > { %v2576_v53 = vld [vmem:[%s2499_s20 + $0x20] sm:$0xf]  ;;  %v724_v54 = vrot.slane %v723_v43, 4  ;;  %v737_v55 = vor.u32 %v736_v44, %v733_v39  ;;  %v742_v56 = vrot.slane %v740_v45, 5  ;;  %v761_v57 = vrot.slane %v759_v34, 4 }
  0x1a   : > { %v751_v58 = vor.u32 %v750_v51, %v747_v50  ;;  %v756_v59 = vrot.slane %v754_v52, 5  ;;  %v764_v60 = vrot.slane %v762_v36, 5  ;;  %v768_v61 = vshll.u32 %v669_v47, 16  ;;  %v2579_v62 = vld [vmem:[%s2499_s20 + $0x28] sm:$0xf] }
  0x1b   : > { %v729_v63 = vsel %vm2571_vm4, %v724_v54, %v728_v49  ;;  %v738_v0 = vrot.slane %v737_v55, 4  ;;  %v773_v1 = vshrl.u32 %v2576_v53, 16  ;;  %v2585_v2 = vld [vmem:[%s2499_s20 + $0x30] sm:$0xf]  ;;  %v2588_v3 = vsel %vm990_vm0, %v2145_v41, 0 }
  0x1c   : > { %v752_v4 = vrot.slane %v751_v58, 4  ;;  %v765_v5 = vor.u32 %v764_v60, %v761_v57  ;;  %v770_v6 = vrot.slane %v768_v61, 5  ;;  %v776_v8 = vshll.u32 %v2576_v53, 16  ;;  %v2592_v11 = vld [vmem:[%s2499_s20 + $0x38] sm:$0xf] }
  0x1d   : > { %2247 = vmatmul.mubr.msk.bf16.vlgmr.msra.gmra.mxu1 %vm977_vm1, %v2111_v42  ;;  %v2597_v15 = vsel %vm2571_vm4, %v738_v0, %v742_v56  ;;  %v787_v18 = vshrl.u32 %v2579_v62, 16  ;;  %v790_v19 = vshll.u32 %v2579_v62, 16  ;;  %v2112_v20 = vcombine.low %v2576_v53, %v2579_v62  ;;  %v671_v21 = vld [vmem:[%s2499_s20 + $0x24] sm:$0x1]  ;;  %v673_v28 = vld [vmem:[%s2499_s20 + $0x2c] sm:$0x1] }
  0x1e   : > { %v2119_v23 = vcombine.low %v729_v63, %v2597_v15  ;;  %2265 = vmatpush3.bf16.msra.mxu1 %v2507_v7  ;;  %v2608_v24 = vsel %vm2571_vm4, %v752_v4, %v756_v59  ;;  %v766_v26 = vrot.slane %v765_v5, 4  ;;  %v801_v27 = vshrl.u32 %v2585_v2, 16  ;;  %v675_v37 = vld [vmem:[%s2499_s20 + $0x34] sm:$0x1]  ;;  %v2154_v38 = vld [vmem:[%s2827_s6 + $0xc] sm:$0x3] }
  0x1f   : > { %2250 = vmatprep.mubr.msk.bf16.mxu1 %vm977_vm1, %v2112_v20  ;;  %v804_v30 = vshll.u32 %v2585_v2, 16  ;;  %v815_v31 = vshrl.u32 %v2592_v11, 16  ;;  %v818_v32 = vshll.u32 %v2592_v11, 16  ;;  %v2113_v7 = vcombine.low %v2585_v2, %v2592_v11  ;;  %2332 = vmatprep.subr.msk.bf16.mxu1 %vm990_vm0, %v2145_v41  ;;  %v677_v44 = vld [vmem:[%s2499_s20 + $0x3c] sm:$0x1] }
  0x20   : > { %2256 = vmatprep.mubr.msk.bf16.mxu0 %vm977_vm1, %v2119_v23  ;;  %v2622_v33 = vsel %vm2571_vm4, %v766_v26, %v770_v6  ;;  %v775_v34 = vrot.slane %v773_v1, 4  ;;  %v778_v35 = vrot.slane %v776_v8, 5  ;;  %v782_v36 = vshll.u32 %v671_v21, 16  ;;  %v689_v59 = vld [vmem:[%s2632_s14] sm:$0xf] }
  0x21   : > { %v2120_v39 = vcombine.low %v2608_v24, %v2622_v33  ;;  %v789_v41 = vrot.slane %v787_v18, 4  ;;  %v792_v42 = vrot.slane %v790_v19, 5  ;;  %v796_v43 = vshll.u32 %v673_v28, 16  ;;  %v691_v6 = vld [vmem:[%s2632_s14 + $0x8] sm:$0xf] }
  0x22   : > { %v779_v45 = vor.u32 %v778_v35, %v775_v34  ;;  %v784_v46 = vrot.slane %v782_v36, 5  ;;  %v803_v47 = vrot.slane %v801_v27, 4  ;;  %v806_v49 = vrot.slane %v804_v30, 5  ;;  %v693_v20 = vld [vmem:[%s2632_s14 + $0x10] sm:$0xf] }
  0x23   : > { %2257 = vmatmul.mubr.msk.bf16.vlgmr.msra.gmra.mxu0 %vm977_vm1, %v2120_v39  ;;  %v793_v50 = vor.u32 %v792_v42, %v789_v41  ;;  %v798_v51 = vrot.slane %v796_v43, 5  ;;  %v810_v52 = vshll.u32 %v675_v37, 16  ;;  %v817_v54 = vrot.slane %v815_v31, 4  ;;  %v695_v21 = vld [vmem:[%s2632_s14 + $0x18] sm:$0xf] }
  0x24   : > { %2275 = vmatpush3.bf16.msra.mxu0 %v2558_v40  ;;  %v780_v55 = vrot.slane %v779_v45, 4  ;;  %v807_v56 = vor.u32 %v806_v49, %v803_v47  ;;  %v820_v57 = vrot.slane %v818_v32, 5  ;;  %v824_v58 = vshll.u32 %v677_v44, 16  ;;  %v2377_v30 = vld [vmem:[%s2641_s18] ss:$8 sps:$4 sm:$0xff]  }
  0x25   : > { %2251 = vmatmul.mubr.msk.bf16.gmra.mxu1 %vm977_vm1, %v2113_v7  ;;  %v794_v60 = vrot.slane %v793_v50, 4  ;;  %v812_v61 = vrot.slane %v810_v52, 5  ;;  %v829_v63 = vshrl.u32 %v689_v59, 16  ;;  %2333 = vmatprep.subr.msk.bf16.mxu0 %vm990_vm0, %v2154_v38  ;;  %v2649_v0 = vsel %vm990_vm0, %v2154_v38, 0  ;;  %v697_v31 = vld [vmem:[%s2632_s14 + $0x20] sm:$0xf] }
  0x26   : > { %v2653_v40 = vsel %vm2571_vm4, %v780_v55, %v784_v46  ;;  %v808_v1 = vrot.slane %v807_v56, 4  ;;  %v821_v4 = vor.u32 %v820_v57, %v817_v54  ;;  %v826_v5 = vrot.slane %v824_v58, 5  ;;  %v699_v39 = vld [vmem:[%s2632_s14 + $0x28] sm:$0xf]  ;;  %v701_v45 = vld [vmem:[%s2632_s14 + $0x30] sm:$0xf] }
  0x27   : > { %v2658_v8 = vsel %vm2571_vm4, %v794_v60, %v798_v51  ;;  %v2660_v18 = vrot.slane %v829_v63, 4  ;;  %v832_v19 = vshll.u32 %v689_v59, 16  ;;  %v843_v28 = vshrl.u32 %v691_v6, 16  ;;  %v2685_v46 = vld [vmem:[%s2827_s6 + $0xe] sm:$0x3] }
  0x28   : > { %v2121_v23 = vcombine.low %v2653_v40, %v2658_v8  ;;  %v2668_v26 = vsel %vm2571_vm4, %v808_v1, %v812_v61  ;;  %v822_v27 = vrot.slane %v821_v4, 4  ;;  %v846_v32 = vshll.u32 %v691_v6, 16  ;;  %v2378_v63 = vld [vmem:[%s2641_s18 + $0x10] ss:$8 sps:$4 sm:$0xff]  }
  0x29   : > { %v2128_v7 = vcombine.low %v689_v59, %v691_v6  ;;  %v857_v34 = vshrl.u32 %v693_v20, 16  ;;  %v860_v35 = vshll.u32 %v693_v20, 16  ;;  %v871_v37 = vshrl.u32 %v695_v21, 16  ;;  %v703_v59 = vld [vmem:[%s2632_s14 + $0x38] sm:$0xf] }
  0x2a   : > { %2260 = vmatprep.mubr.msk.bf16.mxu0 %vm977_vm1, %v2121_v23  ;;  %v2675_v36 = vsel %vm2571_vm4, %v822_v27, %v826_v5  ;;  %v874_v38 = vshll.u32 %v695_v21, 16  ;;  %v834_v42 = vrot.slane %v832_v19, 5  ;;  %v845_v43 = vrot.slane %v843_v28, 4  ;;  %v690_v19 = vld [vmem:[%s2632_s14 + $0x4] sm:$0x1] }
  0x2b   : > { %v2122_v41 = vcombine.low %v2668_v26, %v2675_v36  ;;  %v848_v44 = vrot.slane %v846_v32, 5  ;;  %2266 = vmatprep.mubr.msk.bf16.mxu1 %vm977_vm1, %v2128_v7  ;;  %v859_v47 = vrot.slane %v857_v34, 4  ;;  %v862_v49 = vrot.slane %v860_v35, 5  ;;  %v692_v28 = vld [vmem:[%s2632_s14 + $0xc] sm:$0x1] }
  0x2c   : > { %v2129_v50 = vcombine.low %v693_v20, %v695_v21  ;;  %v885_v51 = vshrl.u32 %v697_v31, 16  ;;  %v888_v52 = vshll.u32 %v697_v31, 16  ;;  %v899_v54 = vshrl.u32 %v699_v39, 16  ;;  %v694_v7 = vld [vmem:[%s2632_s14 + $0x14] sm:$0x1] }
  0x2d   : > { %2261 = vmatmul.mubr.msk.bf16.gmra.mxu0 %vm977_vm1, %v2122_v41  ;;  %v902_v55 = vshll.u32 %v699_v39, 16  ;;  %v2130_v56 = vcombine.low %v697_v31, %v699_v39  ;;  %v873_v57 = vrot.slane %v871_v37, 4  ;;  %v876_v58 = vrot.slane %v874_v38, 5  ;;  %v696_v34 = vld [vmem:[%s2632_s14 + $0x1c] sm:$0x1] }
  0x2e   : > { %2267 = vmatmul.mubr.msk.bf16.vlgmr.msra.gmra.mxu1 %vm977_vm1, %v2129_v50  ;;  %2276 = vmatprep.mubr.msk.bf16.mxu0 %vm977_vm1, %v2377_v30  ;;  %v913_v60 = vshrl.u32 %v701_v45, 16  ;;  %v916_v61 = vshll.u32 %v701_v45, 16  ;;  %v887_v1 = vrot.slane %v885_v51, 4  ;;  %v890_v4 = vrot.slane %v888_v52, 5  ;;  %v2381_v35 = vld [vmem:[%s2641_s18 + $0x20] ss:$8 sps:$4 sm:$0xff]  }
  0x2f   : > { %2285 = vmatpush3.bf16.msra.mxu1 %v2588_v3  ;;  %v901_v5 = vrot.slane %v899_v54, 4  ;;  %2270 = vmatprep.mubr.msk.bf16.mxu1 %vm977_vm1, %v2130_v56  ;;  %v927_v6 = vshrl.u32 %v703_v59, 16  ;;  %v904_v20 = vrot.slane %v902_v55, 5  ;;  %v930_v27 = vshll.u32 %v703_v59, 16  ;;  %v2172_v50 = vld [vmem:[%s2827_s6 + $0x10] sm:$0x3] }
  0x30   : > { %v915_v21 = vrot.slane %v913_v60, 4  ;;  %v918_v23 = vrot.slane %v916_v61, 5  ;;  %2334 = vmatprep.subr.msk.bf16.mxu1 %vm990_vm0, %v2685_v46  ;;  %v2131_v3 = vcombine.low %v701_v45, %v703_v59  ;;  %v835_v30 = vor.u32 %v834_v42, %v2660_v18  ;;  %v698_v55 = vld [vmem:[%s2632_s14 + $0x24] sm:$0x1]  ;;  %v700_v56 = vld [vmem:[%s2632_s14 + $0x2c] sm:$0x1] }
  0x31   : > { %v838_v31 = vshll.u32 %v690_v19, 16  ;;  %v849_v32 = vor.u32 %v848_v44, %v845_v43  ;;  %v852_v37 = vshll.u32 %v692_v28, 16  ;;  %v863_v38 = vor.u32 %v862_v49, %v859_v47 }
  0x32   : > { %v866_v39 = vshll.u32 %v694_v7, 16  ;;  %v877_v41 = vor.u32 %v876_v58, %v873_v57  ;;  %v836_v51 = vrot.slane %v835_v30, 4  ;;  %v880_v54 = vshll.u32 %v696_v34, 16  ;;  %v2382_v7 = vld [vmem:[%s2641_s18 + $0x30] ss:$8 sps:$4 sm:$0xff]  }
  0x33   : > { %v840_v52 = vrot.slane %v838_v31, 5  ;;  %v850_v45 = vrot.slane %v849_v32, 4  ;;  %v854_v18 = vrot.slane %v852_v37, 5  ;;  %v864_v42 = vrot.slane %v863_v38, 4 }
  0x34   : > { %v868_v43 = vrot.slane %v866_v39, 5  ;;  %v878_v44 = vrot.slane %v877_v41, 4  ;;  %v929_v47 = vrot.slane %v927_v6, 4  ;;  %v932_v49 = vrot.slane %v930_v27, 5  ;;  %v702_v6 = vld [vmem:[%s2632_s14 + $0x34] sm:$0x1] }
  0x35   : > { %2277 = vmatmul.mubr.msk.bf16.vlgmr.msra.gmra.mxu0 %vm977_vm1, %v2378_v63  ;;  %v841_v57 = vsel %vm2571_vm4, %v836_v51, %v840_v52  ;;  %v882_v58 = vrot.slane %v880_v54, 5  ;;  %v855_v59 = vsel %vm2571_vm4, %v850_v45, %v854_v18  ;;  %v891_v61 = vor.u32 %v890_v4, %v887_v1 }
  0x36   : > { %2295 = vmatpush3.bf16.msra.mxu0 %v2649_v0  ;;  %2271 = vmatmul.mubr.msk.bf16.gmra.mxu1 %vm977_vm1, %v2131_v3  ;;  %v869_v60 = vsel %vm2571_vm4, %v864_v42, %v868_v43  ;;  %v894_v63 = vshll.u32 %v698_v55, 16  ;;  %v2146_v19 = vcombine.low %v841_v57, %v855_v59  ;;  %v905_v0 = vor.u32 %v904_v20, %v901_v5  ;;  %v704_v3 = vld [vmem:[%s2632_s14 + $0x3c] sm:$0x1]  ;;  %v678_v43 = vld [vmem:[%s572_s26] sm:$0xf] }
  0x37   : > { %2280 = vmatprep.mubr.msk.bf16.mxu0 %vm977_vm1, %v2381_v35  ;;  %v883_v27 = vsel %vm2571_vm4, %v878_v44, %v882_v58  ;;  %2335 = vmatprep.subr.msk.bf16.mxu0 %vm990_vm0, %v2172_v50  ;;  %v908_v28 = vshll.u32 %v700_v56, 16  ;;  %v892_v30 = vrot.slane %v891_v61, 4  ;;  %v919_v32 = vor.u32 %v918_v23, %v915_v21  ;;  %v679_v56 = vld [vmem:[%s572_s26 + $0x4] sm:$0x1] }
  0x38   : > { %v896_v31 = vrot.slane %v894_v63, 5  ;;  %2286 = vmatprep.mubr.msk.bf16.mxu1 %vm977_vm1, %v2146_v19  ;;  %v906_v1 = vrot.slane %v905_v0, 4  ;;  %v922_v34 = vshll.u32 %v702_v6, 16  ;;  %v933_v37 = vor.u32 %v932_v49, %v929_v47 }
  0x39   : > { %v910_v4 = vrot.slane %v908_v28, 5  ;;  %v2147_v35 = vcombine.low %v869_v60, %v883_v27  ;;  %v2155_v38 = vcombine.low %v2536_v22, %v2539_v25  ;;  %v936_v5 = vshll.u32 %v704_v3, 16 }
  0x3a   : > { %v897_v39 = vsel %vm2571_vm4, %v892_v30, %v896_v31  ;;  %v920_v21 = vrot.slane %v919_v32, 4  ;;  %v924_v23 = vrot.slane %v922_v34, 5  ;;  %v934_v41 = vrot.slane %v933_v37, 4 }
  0x3b   : > { %v911_v20 = vsel %vm2571_vm4, %v906_v1, %v910_v4  ;;  %v1700_v51 = vsel %vm990_vm0, %v2685_v46, 0  ;;  %v938_v45 = vrot.slane %v936_v5, 5  ;;  %v2156_v46 = vcombine.low %v2547_v29, %v2576_v53 }
  0x3c   : > { %v2148_v52 = vcombine.low %v897_v39, %v911_v20  ;;  %v925_v22 = vsel %vm2571_vm4, %v920_v21, %v924_v23  ;;  %v2164_v55 = vcombine.low %v2509_v9, %v2511_v10  ;;  %v1795_v18 = vsel %vm990_vm0, %v2172_v50, 0 }
  0x3d   : > { %2281 = vmatmul.mubr.msk.bf16.gmra.mxu0 %vm977_vm1, %v2382_v7  ;;  %v939_v25 = vsel %vm2571_vm4, %v934_v41, %v938_v45  ;;  %v2157_v42 = vcombine.low %v2579_v62, %v2585_v2  ;;  %v941_v29 = vshrl.u32 %v678_v43, 16  ;;  %v944_v53 = vshll.u32 %v678_v43, 16 }
  0x3e   : > { %2287 = vmatmul.mubr.msk.bf16.vlgmr.msra.gmra.mxu1 %vm977_vm1, %v2147_v35  ;;  %2296 = vmatprep.mubr.msk.bf16.mxu0 %vm977_vm1, %v2155_v38  ;;  %v2149_v54 = vcombine.low %v925_v22, %v939_v25  ;;  %v2158_v44 = vcombine.low %v2592_v11, %v678_v43  ;;  %v2165_v9 = vcombine.low %v2514_v12, %v2516_v13  ;;  %v950_v47 = vshll.u32 %v679_v56, 16  ;;  %v688_v13 = vld [vmem:[%s606_s10] sm:$0xf] }
  0x3f   : > { %2305 = vmatpush3.bf16.msra.mxu1 %v1700_v51  ;;  %2290 = vmatprep.mubr.msk.bf16.mxu1 %vm977_vm1, %v2148_v52  ;;  %v943_v10 = vrot.slane %v941_v29, 4  ;;  %v946_v50 = vrot.slane %v944_v53, 5  ;;  %v2173_v62 = vcombine.low %v2597_v15, %v2608_v24  ;;  %v2166_v2 = vcombine.low %v2518_v14, %v2523_v16 }
  0x40   : > { %v2174_v11 = vcombine.low %v2622_v33, %v2653_v40  ;;  %v952_v14 = vrot.slane %v950_v47, 5  ;;  %v2167_v16 = vcombine.low %v2525_v17, %v688_v13  ;;  %v2175_v15 = vcombine.low %v2658_v8, %v2668_v26 }
  0x41   : > { %v947_v12 = vor.u32 %v946_v50, %v943_v10 }
  0x43   : > { %v948_v24 = vrot.slane %v947_v12, 4 }
  0x45   : > { %2297 = vmatmul.mubr.msk.bf16.vlgmr.msra.gmra.mxu0 %vm977_vm1, %v2156_v46  ;;  %v953_v49 = vsel %vm2571_vm4, %v948_v24, %v952_v14 }
  0x46   : > { %2315 = vmatpush3.bf16.msra.mxu0 %v1795_v18  ;;  %2291 = vmatmul.mubr.msk.bf16.gmra.mxu1 %vm977_vm1, %v2149_v54  ;;  %v2176_v57 = vcombine.low %v2675_v36, %v953_v49 }
  0x47   : > { %2300 = vmatprep.mubr.msk.bf16.mxu0 %vm977_vm1, %v2157_v42  ;;  %2306 = vmatprep.mubr.msk.bf16.mxu1 %vm977_vm1, %v2164_v55 }
  0x4d   : > { %2301 = vmatmul.mubr.msk.bf16.gmra.mxu0 %vm977_vm1, %v2158_v44 }
  0x4e   : > { %2307 = vmatmul.mubr.msk.bf16.vlgmr.msra.gmra.mxu1 %vm977_vm1, %v2165_v9  ;;  %2316 = vmatprep.mubr.msk.bf16.mxu0 %vm977_vm1, %v2173_v62 }
  0x4f   : > { %2310 = vmatprep.mubr.msk.bf16.mxu1 %vm977_vm1, %v2166_v2 }
  0x55   : > { %2317 = vmatmul.mubr.msk.bf16.vlgmr.msra.gmra.mxu0 %vm977_vm1, %v2174_v11 }
  0x56   : > { %2311 = vmatmul.mubr.msk.bf16.gmra.mxu1 %vm977_vm1, %v2167_v16  ;;  %2320 = vmatprep.mubr.msk.bf16.mxu0 %vm977_vm1, %v2175_v15 }
  0x5d   : > { %2321 = vmatmul.mubr.msk.bf16.gmra.mxu0 %vm977_vm1, %v2176_v57 }
  0xd4   : > { %v2238_v33 = vpop.f32.mrf.mxu0 }
  0xd5   : > { %v2242_v40 = vpop.f32.mrf.mxu1 }
  0xd6   : > { %v1028_v17 = vpop.f32.mrf.mxu0 }
  0xd7   : > { %v1044_v58 = vpop.f32.mrf.mxu1 }
  0xd8   : > { %v2239_v8 = vpop.f32.mrf.mxu0 }
  0xd9   : > { %v2243_v59 = vpop.f32.mrf.mxu1 }
  0xda   : > { %v1031_v61 = vpop.f32.mrf.mxu0 }
  0xdb   : > { %v2781_v26 = vpop.f32.mrf.mxu1 }
  0xdd   : > { %v2248_v60 = vpop.f32.mrf.mxu1 }
  0xde   : > { %v1137_v46 = vadd.f32 %v2248_v60, %v2238_v33 }
  0xdf   : > { %v1128_v63 = vpop.f32.mrf.mxu1 }
  0xe0   : > { %v1129_v18 = vadd.f32 %v1128_v63, %v1028_v17 }
  0xe1   : > { %v2249_v6 = vpop.f32.mrf.mxu1 }
  0xe2   : > { %v1140_v53 = vadd.f32 %v2249_v6, %v2239_v8 }
  0xe3   : > { %v2258_v19 = vpop.f32.mrf.mxu0  ;;  %v1131_v27 = vpop.f32.mrf.mxu1 }
  0xe4   : > { %v1255_v29 = vadd.f32 %v2258_v19, %v1137_v46  ;;  %v1132_v50 = vadd.f32 %v1131_v27, %v1031_v61 }
  0xe5   : > { %v1222_v48 = vpop.f32.mrf.mxu0  ;;  %v2252_v0 = vpop.f32.mrf.mxu1 }
  0xe6   : > { %v1253_v10 = vadd.f32 %v1222_v48, %v1129_v18  ;;  %v1153_v12 = vadd.f32 %v2252_v0, %v2242_v40 }
  0xe7   : > { %v2259_v28 = vpop.f32.mrf.mxu0  ;;  %v1144_v36 = vpop.f32.mrf.mxu1 }
  0xe8   : > { %v1256_v47 = vadd.f32 %v2259_v28, %v1140_v53  ;;  %v1145_v15 = vadd.f32 %v1144_v36, %v1044_v58 }
  0xe9   : > { %v1225_v3 = vpop.f32.mrf.mxu0  ;;  %v2253_v30 = vpop.f32.mrf.mxu1 }
  0xea   : > { %v1254_v16 = vadd.f32 %v1225_v3, %v1132_v50  ;;  %v1156_v33 = vadd.f32 %v2253_v30, %v2243_v59 }
  0xeb   : > { %v1147_v31 = vpop.f32.mrf.mxu1 }
  0xec   : > { %v1148_v19 = vadd.f32 %v1147_v31, %v2781_v26 }
  0xed   : > { %v2262_v32 = vpop.f32.mrf.mxu0 }
  0xee   : > { %v2268_v7 = vpop.f32.mrf.mxu1  ;;  %v1259_v8 = vadd.f32 %v2262_v32, %v1153_v12 }
  0xef   : > { %v1238_v1 = vpop.f32.mrf.mxu0  ;;  %v1365_v62 = vadd.f32 %v2268_v7, %v1255_v29 }
  0xf0   : > { %v1332_v4 = vpop.f32.mrf.mxu1  ;;  %v1257_v48 = vadd.f32 %v1238_v1, %v1145_v15 }
  0xf1   : > { %v2263_v34 = vpop.f32.mrf.mxu0  ;;  %v1363_v13 = vadd.f32 %v1332_v4, %v1253_v10 }
  0xf2   : > { %v2269_v37 = vpop.f32.mrf.mxu1  ;;  %v1260_v3 = vadd.f32 %v2263_v34, %v1156_v33 }
  0xf3   : > { %v1241_v35 = vpop.f32.mrf.mxu0  ;;  %v1366_v49 = vadd.f32 %v2269_v37, %v1256_v47 }
  0xf4   : > { %v1335_v38 = vpop.f32.mrf.mxu1  ;;  %v1258_v32 = vadd.f32 %v1241_v35, %v1148_v19  ;;  %v2181_v35 = vld [vmem:[%s2828_s7] ss:$0 sm:$0xff] }
  0xf5   : > { %v2278_v39 = vpop.f32.mrf.mxu0  ;;  %v1364_v63 = vadd.f32 %v1335_v38, %v1254_v16 }
  0xf6   : > { %v2272_v5 = vpop.f32.mrf.mxu1  ;;  %v1475_v24 = vadd.f32 %v2278_v39, %v1365_v62 }
  0xf7   : > { %v1442_v20 = vpop.f32.mrf.mxu0  ;;  %v1369_v0 = vadd.f32 %v2272_v5, %v1259_v8 }
  0xf8   : > { %v1348_v21 = vpop.f32.mrf.mxu1  ;;  %v1473_v60 = vadd.f32 %v1442_v20, %v1363_v13 }
  0xf9   : > { %v2279_v23 = vpop.f32.mrf.mxu0  ;;  %v1367_v4 = vadd.f32 %v1348_v21, %v1257_v48 }
  0xfa   : > { %v2273_v41 = vpop.f32.mrf.mxu1  ;;  %v1476_v40 = vadd.f32 %v2279_v23, %v1366_v49 }
  0xfb   : > { %v1445_v51 = vpop.f32.mrf.mxu0  ;;  %v1370_v38 = vadd.f32 %v2273_v41, %v1260_v3 }
  0xfc   : > { %v1351_v52 = vpop.f32.mrf.mxu1  ;;  %v1474_v36 = vadd.f32 %v1445_v51, %v1364_v63 }
  0xfd   : > { %v2282_v45 = vpop.f32.mrf.mxu0  ;;  %v1368_v23 = vadd.f32 %v1351_v52, %v1258_v32 }
  0xfe   : > { %v2288_v22 = vpop.f32.mrf.mxu1  ;;  %v1479_v20 = vadd.f32 %v2282_v45, %v1369_v0 }
  0xff   : > { %v1458_v25 = vpop.f32.mrf.mxu0  ;;  %v1577_v6 = vadd.f32 %v2288_v22, %v1475_v24 }
 0x100   : > { %v1544_v54 = vpop.f32.mrf.mxu1  ;;  %v1477_v46 = vadd.f32 %v1458_v25, %v1367_v4 }
 0x101   : > { %v2283_v55 = vpop.f32.mrf.mxu0  ;;  %v1575_v28 = vadd.f32 %v1544_v54, %v1473_v60 }
 0x102   : > { %v2289_v42 = vpop.f32.mrf.mxu1  ;;  %v1480_v18 = vadd.f32 %v2283_v55, %v1370_v38 }
 0x103   : > { %v2783_v43 = vpop.f32.mrf.mxu0  ;;  %v1578_v59 = vadd.f32 %v2289_v42, %v1476_v40 }
 0x104   : > { %v1547_v44 = vpop.f32.mrf.mxu1  ;;  %v1478_v52 = vadd.f32 %v2783_v43, %v1368_v23 }
 0x105   : > { %v2298_v9 = vpop.f32.mrf.mxu0  ;;  %v1576_v26 = vadd.f32 %v1547_v44, %v1474_v36 }
 0x106   : > { %v2292_v2 = vpop.f32.mrf.mxu1  ;;  %v1673_v37 = vadd.f32 %v2298_v9, %v1577_v6 }
 0x107   : > { %v1640_v56 = vpop.f32.mrf.mxu0  ;;  %v1581_v34 = vadd.f32 %v2292_v2, %v1479_v20 }
 0x108   : > { %v1560_v11 = vpop.f32.mrf.mxu1  ;;  %v1671_v22 = vadd.f32 %v1640_v56, %v1575_v28 }
 0x109   : > { %v2299_v14 = vpop.f32.mrf.mxu0  ;;  %v1579_v45 = vadd.f32 %v1560_v11, %v1477_v46 }
 0x10a   : > { %v2293_v57 = vpop.f32.mrf.mxu1  ;;  %v1674_v54 = vadd.f32 %v2299_v14, %v1578_v59 }
 0x10b   : > { %v1643_v17 = vpop.f32.mrf.mxu0  ;;  %v1582_v9 = vadd.f32 %v2293_v57, %v1480_v18 }
 0x10c   : > { %v1563_v61 = vpop.f32.mrf.mxu1  ;;  %v1672_v41 = vadd.f32 %v1643_v17, %v1576_v26 }
 0x10d   : > { %v2302_v27 = vpop.f32.mrf.mxu0  ;;  %v1580_v56 = vadd.f32 %v1563_v61, %v1478_v52 }
 0x10e   : > { %v2308_v7 = vpop.f32.mrf.mxu1  ;;  %v1677_v55 = vadd.f32 %v2302_v27, %v1581_v34 }
 0x10f   : > { %v1656_v58 = vpop.f32.mrf.mxu0  ;;  %v1769_v31 = vadd.f32 %v2308_v7, %v1673_v37 }
 0x110   : > { %v1736_v30 = vpop.f32.mrf.mxu1  ;;  %v1675_v12 = vadd.f32 %v1656_v58, %v1579_v45 }
 0x111   : > { %v2303_v39 = vpop.f32.mrf.mxu0  ;;  %v1767_v51 = vadd.f32 %v1736_v30, %v1671_v22 }
 0x112   : > { %v2309_v1 = vpop.f32.mrf.mxu1  ;;  %v1678_v15 = vadd.f32 %v2303_v39, %v1582_v9 }
 0x113   : > { %v1659_v5 = vpop.f32.mrf.mxu0  ;;  %v1770_v53 = vadd.f32 %v2309_v1, %v1674_v54 }
 0x114   : > { %v1739_v21 = vpop.f32.mrf.mxu1  ;;  %v1676_v8 = vadd.f32 %v1659_v5, %v1580_v56 }
 0x115   : > { %v2318_v29 = vpop.f32.mrf.mxu0  ;;  %v1768_v62 = vadd.f32 %v1739_v21, %v1672_v41 }
 0x116   : > { %v1864_v42 = vadd.f32 %v2318_v29, %v1769_v31  ;;  %v2312_v44 = vpop.f32.mrf.mxu1 }
 0x117   : > { %v1831_v25 = vpop.f32.mrf.mxu0  ;;  %v1773_v11 = vadd.f32 %v2312_v44, %v1677_v55 }
 0x118   : > { %v1879_v10 = vadd.f32 %v2181_v35, %v1864_v42  ;;  %v1862_v50 = vadd.f32 %v1831_v25, %v1767_v51  ;;  %v1752_v2 = vpop.f32.mrf.mxu1 }
 0x119   : > { %v2319_v47 = vpop.f32.mrf.mxu0  ;;  %v1771_v57 = vadd.f32 %v1752_v2, %v1675_v12 }
 0x11a   : > { %1887 = vst.msk [vmem:[%s2794_s27 + $0x10] sm:$0xff] %vm977_vm1, %v1879_v10  ;;  %v1877_v43 = vadd.f32 %v2181_v35, %v1862_v50  ;;  %v1865_v13 = vadd.f32 %v2319_v47, %v1770_v53  ;;  %v2313_v14 = vpop.f32.mrf.mxu1 }
 0x11b   : > { %v1834_v16 = vpop.f32.mrf.mxu0  ;;  %v1774_v6 = vadd.f32 %v2313_v14, %v1678_v15 }
 0x11c   : > { %1885 = vst.msk [vmem:[%s2794_s27] sm:$0xff] %vm977_vm1, %v1877_v43  ;;  %v1880_v24 = vadd.f32 %v2181_v35, %v1865_v13  ;;  %v1863_v49 = vadd.f32 %v1834_v16, %v1768_v62  ;;  %v1755_v17 = vpop.f32.mrf.mxu1 }
 0x11d   : > { %v2322_v33 = vpop.f32.mrf.mxu0  ;;  %v1772_v48 = vadd.f32 %v1755_v17, %v1676_v8 }
 0x11e   : > { %1888 = vst.msk [vmem:[%s2794_s27 + $0x18] sm:$0xff] %vm977_vm1, %v1880_v24  ;;  %v1878_v60 = vadd.f32 %v2181_v35, %v1863_v49  ;;  %v1868_v63 = vadd.f32 %v2322_v33, %v1773_v11 }
 0x11f   : > { %v1847_v61 = vpop.f32.mrf.mxu0 }
 0x120   : > { %1886 = vst.msk [vmem:[%s2794_s27 + $0x8] sm:$0xff] %vm977_vm1, %v1878_v60  ;;  %v1883_v19 = vadd.f32 %v2181_v35, %v1868_v63  ;;  %v1866_v27 = vadd.f32 %v1847_v61, %v1771_v57 }
 0x121   : > { %v2323_v40 = vpop.f32.mrf.mxu0 }
 0x122   : > { %1891 = vst.msk [vmem:[%s2794_s27 + $0x30] sm:$0xff] %vm977_vm1, %v1883_v19  ;;  %v1881_v0 = vadd.f32 %v2181_v35, %v1866_v27  ;;  %v1869_v28 = vadd.f32 %v2323_v40, %v1774_v6 }
 0x123   : > { %v1850_v7 = vpop.f32.mrf.mxu0 }
 0x124   : > { %1889 = vst.msk [vmem:[%s2794_s27 + $0x20] sm:$0xff] %vm977_vm1, %v1881_v0  ;;  %v1884_v3 = vadd.f32 %v2181_v35, %v1869_v28  ;;  %v1867_v58 = vadd.f32 %v1850_v7, %v1772_v48 }
 0x126   : > { %1892 = vst.msk [vmem:[%s2794_s27 + $0x38] sm:$0xff] %vm977_vm1, %v1884_v3  ;;  %v1882_v36 = vadd.f32 %v2181_v35, %v1867_v58 }
 0x128   : > { %1890 = vst.msk [vmem:[%s2794_s27 + $0x28] sm:$0xff] %vm977_vm1, %v1882_v36 }
 0x129 PF: > { %s18_s29 = sadd.s32 1, %s2407_s29   ;;  %s2832_s27 = smov %s2403_s28 }
 0x12a   : > { %p15_p5 = scmp.ge.s32.totalorder %s18_s29, 4   ;;  %s2833_s28 = smov %s2835_s30 }
 0x12c   :  { %17 = sbr.rel (!%p15_p5) target bundleno = 2 (0x2), region = 105 }

</bundles_post_ra>
